<compile_context>
chip_gen: v7x
topology: tpu7x:2x2x1
jax: 0.10.0
libtpu: 0.0.40
codegen_flags: <defaults>
</compile_context>

<pallas_src>
import jax
import jax.numpy as jnp
import numpy as np
from jax.experimental import pallas as pl
from jax.experimental.pallas import tpu as pltpu

ATTN_DIM = 32

TB_MAX = 1024                          # rows per grid step (post-reshape, lane-dense)
SINGLE_BLOCK_B = 256                   # below this, run the whole batch as one block
VMEM_INPUT_BUDGET = 24 * 1024 * 1024   # double-buffered input bytes per step (v7x-safe)


def _cdiv(a, b):
    return -(-a // b)


def _round_up(a, m):
    return _cdiv(a, m) * m


# ----------------------------- Pallas kernel --------------------------------
def _fd_kernel(author_ref, title_ref, text_ref,
               fa_w, ft_w, fx_w, fc_b, cls_ref,
               out_ref):
    f32 = jnp.float32

    # The reference Attention applies F.softmax(o, dim=0) to a (1, K) tensor, which is
    # identically 1.0, so its output is the column sum of X over K (the tanh/context
    # path is dead code).  That K-sum is folded into the (K*D, 1) tiled FC weights in
    # the wrapper, so each score is one lane-dense (TB, K*D) x (K*D, 1) MXU matmul
    # + bias + sigmoid.  Compute is negligible; the kernel is pure HBM streaming.
    s_a = jax.nn.sigmoid(
        jnp.dot(author_ref[...], fa_w[...], preferred_element_type=f32) + fc_b[:, 0:1])  # (TB, 1)
    s_t = jax.nn.sigmoid(
        jnp.dot(title_ref[...], ft_w[...], preferred_element_type=f32) + fc_b[:, 1:2])   # (TB, 1)
    s_x = jax.nn.sigmoid(
        jnp.dot(text_ref[...], fx_w[...], preferred_element_type=f32) + fc_b[:, 2:3])    # (TB, 1)

    # Classifier: logits = [s_a s_t s_x] @ Wc.T + bc.
    # cls_ref is (4, 2): rows 0..2 hold Wc.T, row 3 holds the bias.
    cls = cls_ref[...]
    logits = (s_a * cls[0:1, :]
              + s_t * cls[1:2, :]
              + s_x * cls[2:3, :]
              + cls[3:4, :])                                                              # (TB, 2)

    # Exact 2-class softmax: p1 = sigmoid(l1 - l0), p0 = 1 - p1.
    # (EUP sigmoid; no cross-lane max/sum, no divide.)
    p1 = jax.nn.sigmoid(logits[:, 1:2] - logits[:, 0:1])
    out_ref[...] = jnp.concatenate([1.0 - p1, p1], axis=1)


# ------------------------------- wrapper -------------------------------------
def _pick_tb(B, row_bytes):
    if B <= SINGLE_BLOCK_B:
        return B                                            # single block == full batch dim
    cap_vmem = max(8, (VMEM_INPUT_BUDGET // (2 * row_bytes)) // 8 * 8)
    cap_split = _round_up(_cdiv(B, 2), 8)                   # >= 2 grid steps (v7x 2-TC split)
    return max(8, min(TB_MAX, cap_vmem, cap_split))


def _fd_model_forward_impl(params, author_emb, title_emb, text_emb, *, tb=None):
    B, Ka, Da = author_emb.shape
    _, Kt, Ds = title_emb.shape
    _, Kx, Ds2 = text_emb.shape
    assert Ds2 == Ds
    KDa, KDt, KDx = Ka * Da, Kt * Ds, Kx * Ds

    # Lane-dense 2-D views: free, contiguous reshapes (no data movement).
    a2 = author_emb.reshape(B, KDa)
    t2 = title_emb.reshape(B, KDt)
    x2 = text_emb.reshape(B, KDx)

    row_bytes = 4 * (KDa + KDt + KDx + 2)
    if tb is None:
        TB = _pick_tb(B, row_bytes)
    else:
        TB = min(int(tb), B)
    assert TB == B or TB % 8 == 0, "tile rows must be a multiple of 8 (or the full batch)"
    # Ragged batch: no host-side padding copy; Pallas masks the partial boundary block.
    nb = _cdiv(B, TB)

    # Consolidated weights; the attention K-sum is folded in by tiling the FC weight over K.
    fa_w = jnp.tile(params["author_fc_w"].T, (Ka, 1))                  # (Ka*Da, 1)
    ft_w = jnp.tile(params["title_fc_w"].T, (Kt, 1))                   # (Kt*Ds, 1)
    fx_w = jnp.tile(params["text_fc_w"].T, (Kx, 1))                    # (Kx*Ds, 1)
    fc_b = jnp.concatenate([params["author_fc_b"],
                            params["title_fc_b"],
                            params["text_fc_b"]], axis=1)              # (1, 3)
    cls = jnp.concatenate([params["classifier_w"].T,
                           params["classifier_b"]], axis=0)            # (4, 2)
    weights = [fa_w, ft_w, fx_w, fc_b, cls]
    weight_bytes = sum(int(np.prod(w.shape)) * 4 for w in weights)

    in_specs = [
        pl.BlockSpec((TB, KDa), lambda i: (i, 0)),
        pl.BlockSpec((TB, KDt), lambda i: (i, 0)),
        pl.BlockSpec((TB, KDx), lambda i: (i, 0)),
    ] + [pl.BlockSpec(w.shape, lambda i: (0, 0)) for w in weights]     # constant block -> resident

    # VMEM budget: 2 pipeline buffers per input + output + weights, with headroom.
    needed = 2 * TB * row_bytes + weight_bytes + (1 << 20)
    vmem_limit = int(min(48 * 1024 * 1024, max(2 * needed, 16 * 1024 * 1024)))

    cost = pl.CostEstimate(
        flops=int(2 * B * (KDa + KDt + KDx) + 16 * B),
        transcendentals=int(4 * B),
        bytes_accessed=int(4 * B * (KDa + KDt + KDx) + 8 * B + weight_bytes),
    )

    out = pl.pallas_call(
        _fd_kernel,
        out_shape=jax.ShapeDtypeStruct((B, 2), jnp.float32),
        grid_spec=pltpu.PrefetchScalarGridSpec(
            num_scalar_prefetch=0,
            grid=(nb,),
            in_specs=in_specs,
            out_specs=pl.BlockSpec((TB, 2), lambda i: (i, 0)),
        ),
        compiler_params=pltpu.CompilerParams(
            # "parallel" lets the batch grid axis shard across TensorCores on multi-TC chips.
            dimension_semantics=("parallel",),
            vmem_limit_bytes=vmem_limit,
        ),
        cost_estimate=cost,
    )(a2, t2, x2, *weights)
    return out


fd_model_forward = jax.jit(_fd_model_forward_impl, static_argnames=("tb",))


# --------------------------- params / reference ------------------------------
def init_params(key, author_dim, sentence_dim, attn_dim=ATTN_DIM):
    ks = jax.random.split(key, 10)

    def linear(k, out_dim, in_dim):
        kw, kb = jax.random.split(k)
        scale = 1.0 / np.sqrt(in_dim)
        w = jax.random.uniform(kw, (out_dim, in_dim), jnp.float32, -scale, scale)
        b = jax.random.uniform(kb, (1, out_dim), jnp.float32, -scale, scale)
        return w, b

    a_w, a_b = linear(ks[0], attn_dim, author_dim)
    t_w, t_b = linear(ks[1], attn_dim, sentence_dim)
    x_w, x_b = linear(ks[2], attn_dim, sentence_dim)
    fa_w, fa_b = linear(ks[3], 1, author_dim)
    ft_w, ft_b = linear(ks[4], 1, sentence_dim)
    fx_w, fx_b = linear(ks[5], 1, sentence_dim)
    c_w, c_b = linear(ks[6], 2, 3)

    return {
        # Attention params: kept for module fidelity; they cancel out in the forward
        # (softmax over a size-1 dim is all-ones), so the kernel does not consume them.
        "author_attn_w": a_w, "author_attn_b": a_b,
        "author_attn_ctx": jax.random.normal(ks[7], (1, attn_dim), jnp.float32),
        "title_attn_w": t_w, "title_attn_b": t_b,
        "title_attn_ctx": jax.random.normal(ks[8], (1, attn_dim), jnp.float32),
        "text_attn_w": x_w, "text_attn_b": x_b,
        "text_attn_ctx": jax.random.normal(ks[9], (1, attn_dim), jnp.float32),
        "author_fc_w": fa_w, "author_fc_b": fa_b,
        "title_fc_w": ft_w, "title_fc_b": ft_b,
        "text_fc_w": fx_w, "text_fc_b": fx_b,
        "classifier_w": c_w,      # (2, 3)  PyTorch nn.Linear convention
        "classifier_b": c_b,      # (1, 2)
    }


def fd_model_reference(params, author_emb, title_emb, text_emb):
    """Pure-JAX literal mirror of the PyTorch forward (per-sample loop)."""
    def attn(X, w, b, ctx):
        o = jnp.tanh(X @ w.T + b)
        s = ctx @ o.T                       # (1, K)
        p = jax.nn.softmax(s, axis=0)       # softmax over size-1 dim (literal spec)
        return p @ X                        # (1, D)

    outs = []
    for i in range(author_emb.shape[0]):
        a = attn(author_emb[i], params["author_attn_w"], params["author_attn_b"],
                 params["author_attn_ctx"])
        t = attn(title_emb[i], params["title_attn_w"], params["title_attn_b"],
                 params["title_attn_ctx"])
        x = attn(text_emb[i], params["text_attn_w"], params["text_attn_b"],
                 params["text_attn_ctx"])
        s_a = a @ params["author_fc_w"].T + params["author_fc_b"]
        s_t = t @ params["title_fc_w"].T + params["title_fc_b"]
        s_x = x @ params["text_fc_w"].T + params["text_fc_b"]
        score = jax.nn.sigmoid(jnp.concatenate([s_a, s_t, s_x], axis=1))      # (1, 3)
        logits = score @ params["classifier_w"].T + params["classifier_b"]    # (1, 2)
        outs.append(jax.nn.softmax(logits, axis=1))
    return jnp.concatenate(outs, axis=0)


# --------------------------------- main ---------------------------------------
if __name__ == "__main__":
    AUTHOR_DIM = 16
    SENTENCE_DIM = 32
    K_AUTHOR, K_TITLE, K_TEXT = 4, 8, 8

    key = jax.random.PRNGKey(0)
    k_params, k_a, k_t, k_x, k_a2, k_t2, k_x2 = jax.random.split(key, 7)
    params = init_params(k_params, AUTHOR_DIM, SENTENCE_DIM)

    # --- case 1: tiny batch (single-block path) ---
    B = 2
    author_emb = jax.random.normal(k_a, (B, K_AUTHOR, AUTHOR_DIM), jnp.float32)
    title_emb = jax.random.normal(k_t, (B, K_TITLE, SENTENCE_DIM), jnp.float32)
    text_emb = jax.random.normal(k_x, (B, K_TEXT, SENTENCE_DIM), jnp.float32)

    out = jax.block_until_ready(fd_model_forward(params, author_emb, title_emb, text_emb))
    ref = fd_model_reference(params, author_emb, title_emb, text_emb)
    np.testing.assert_allclose(np.asarray(out), np.asarray(ref), rtol=1e-5, atol=1e-5)
    assert out.shape == (B, 2)

    # --- case 2: ragged multi-block path (partial boundary block, no host-side padding) ---
    B2 = 37
    author2 = jax.random.normal(k_a2, (B2, K_AUTHOR, AUTHOR_DIM), jnp.float32)
    title2 = jax.random.normal(k_t2, (B2, K_TITLE, SENTENCE_DIM), jnp.float32)
    text2 = jax.random.normal(k_x2, (B2, K_TEXT, SENTENCE_DIM), jnp.float32)

    out2 = jax.block_until_ready(fd_model_forward(params, author2, title2, text2, tb=16))
    ref2 = fd_model_reference(params, author2, title2, text2)
    np.testing.assert_allclose(np.asarray(out2), np.asarray(ref2), rtol=1e-5, atol=1e-5)
    assert out2.shape == (B2, 2)

    print("KERNEL_OK")
</pallas_src>

<mosaic_0001>
module attributes {stable_mosaic.version = 11 : i64} {
  func.func @_fd_kernel(%arg0: i32, %arg1: memref<2x64xf32, #tpu.memory_space<vmem>>, %arg2: memref<2x256xf32, #tpu.memory_space<vmem>>, %arg3: memref<2x256xf32, #tpu.memory_space<vmem>>, %arg4: memref<64x1xf32, #tpu.memory_space<vmem>>, %arg5: memref<256x1xf32, #tpu.memory_space<vmem>>, %arg6: memref<256x1xf32, #tpu.memory_space<vmem>>, %arg7: memref<1x3xf32, #tpu.memory_space<vmem>>, %arg8: memref<4x2xf32, #tpu.memory_space<vmem>>, %arg9: memref<2x2xf32, #tpu.memory_space<vmem>>) attributes {dimension_semantics = [#tpu.dimension_semantics<parallel>], iteration_bounds = array<i64: 1>, scalar_prefetch = 0 : i64, scratch_operands = 0 : i64, tpu.core_type = #tpu.core_type<tc>, window_params = [{transform_indices = @transform_0, window_bounds = array<i64: 2, 64>}, {transform_indices = @transform_1, window_bounds = array<i64: 2, 256>}, {transform_indices = @transform_2, window_bounds = array<i64: 2, 256>}, {pipeline_mode = #tpu.pipeline_mode<synchronous>, transform_indices = @transform_3, window_bounds = array<i64: 64, 1>}, {pipeline_mode = #tpu.pipeline_mode<synchronous>, transform_indices = @transform_4, window_bounds = array<i64: 256, 1>}, {pipeline_mode = #tpu.pipeline_mode<synchronous>, transform_indices = @transform_5, window_bounds = array<i64: 256, 1>}, {pipeline_mode = #tpu.pipeline_mode<synchronous>, transform_indices = @transform_6, window_bounds = array<i64: 1, 3>}, {pipeline_mode = #tpu.pipeline_mode<synchronous>, transform_indices = @transform_7, window_bounds = array<i64: 4, 2>}, {transform_indices = @transform_8, window_bounds = array<i64: 2, 2>}]} {
    %c0 = arith.constant 0 : index
    %c0_0 = arith.constant 0 : index
    %0 = vector.load %arg1[%c0, %c0_0] : memref<2x64xf32, #tpu.memory_space<vmem>>, vector<2x64xf32>
    %c0_1 = arith.constant 0 : index
    %c0_2 = arith.constant 0 : index
    %1 = vector.load %arg4[%c0_1, %c0_2] : memref<64x1xf32, #tpu.memory_space<vmem>>, vector<64x1xf32>
    %cst = arith.constant dense<0.000000e+00> : vector<2x1xf32>
    %2 = tpu.matmul %0, %1, %cst {dimension_numbers = #tpu.dot_dimension_numbers<[1], [0], [0], [1], [0, 0, 1, 1], [], []>} : vector<2x64xf32>, vector<64x1xf32>, vector<2x1xf32> -> vector<2x1xf32>
    %c0_3 = arith.constant 0 : index
    %c0_4 = arith.constant 0 : index
    %3 = vector.load %arg7[%c0_3, %c0_4] : memref<1x3xf32, #tpu.memory_space<vmem>>, vector<1x1xf32>
    %4 = vector.broadcast %3 : vector<1x1xf32> to vector<2x1xf32>
    %5 = arith.addf %2, %4 : vector<2x1xf32>
    %6 = arith.negf %5 : vector<2x1xf32>
    %7 = math.exp %6 : vector<2x1xf32>
    %cst_5 = arith.constant 1.000000e+00 : f32
    %8 = vector.broadcast %cst_5 : f32 to vector<2x1xf32>
    %9 = arith.addf %8, %7 : vector<2x1xf32>
    %10 = arith.divf %8, %9 : vector<2x1xf32>
    %c0_6 = arith.constant 0 : index
    %c0_7 = arith.constant 0 : index
    %11 = vector.load %arg2[%c0_6, %c0_7] : memref<2x256xf32, #tpu.memory_space<vmem>>, vector<2x256xf32>
    %c0_8 = arith.constant 0 : index
    %c0_9 = arith.constant 0 : index
    %12 = vector.load %arg5[%c0_8, %c0_9] : memref<256x1xf32, #tpu.memory_space<vmem>>, vector<256x1xf32>
    %cst_10 = arith.constant dense<0.000000e+00> : vector<2x1xf32>
    %13 = tpu.matmul %11, %12, %cst_10 {dimension_numbers = #tpu.dot_dimension_numbers<[1], [0], [0], [1], [0, 0, 1, 1], [], []>} : vector<2x256xf32>, vector<256x1xf32>, vector<2x1xf32> -> vector<2x1xf32>
    %c0_11 = arith.constant 0 : index
    %c1 = arith.constant 1 : index
    %14 = vector.load %arg7[%c0_11, %c1] : memref<1x3xf32, #tpu.memory_space<vmem>>, vector<1x1xf32>
    %15 = vector.broadcast %14 : vector<1x1xf32> to vector<2x1xf32>
    %16 = arith.addf %13, %15 : vector<2x1xf32>
    %17 = arith.negf %16 : vector<2x1xf32>
    %18 = math.exp %17 : vector<2x1xf32>
    %cst_12 = arith.constant 1.000000e+00 : f32
    %19 = vector.broadcast %cst_12 : f32 to vector<2x1xf32>
    %20 = arith.addf %19, %18 : vector<2x1xf32>
    %21 = arith.divf %19, %20 : vector<2x1xf32>
    %c0_13 = arith.constant 0 : index
    %c0_14 = arith.constant 0 : index
    %22 = vector.load %arg3[%c0_13, %c0_14] : memref<2x256xf32, #tpu.memory_space<vmem>>, vector<2x256xf32>
    %c0_15 = arith.constant 0 : index
    %c0_16 = arith.constant 0 : index
    %23 = vector.load %arg6[%c0_15, %c0_16] : memref<256x1xf32, #tpu.memory_space<vmem>>, vector<256x1xf32>
    %cst_17 = arith.constant dense<0.000000e+00> : vector<2x1xf32>
    %24 = tpu.matmul %22, %23, %cst_17 {dimension_numbers = #tpu.dot_dimension_numbers<[1], [0], [0], [1], [0, 0, 1, 1], [], []>} : vector<2x256xf32>, vector<256x1xf32>, vector<2x1xf32> -> vector<2x1xf32>
    %c0_18 = arith.constant 0 : index
    %c2 = arith.constant 2 : index
    %25 = vector.load %arg7[%c0_18, %c2] : memref<1x3xf32, #tpu.memory_space<vmem>>, vector<1x1xf32>
    %26 = vector.broadcast %25 : vector<1x1xf32> to vector<2x1xf32>
    %27 = arith.addf %24, %26 : vector<2x1xf32>
    %28 = arith.negf %27 : vector<2x1xf32>
    %29 = math.exp %28 : vector<2x1xf32>
    %cst_19 = arith.constant 1.000000e+00 : f32
    %30 = vector.broadcast %cst_19 : f32 to vector<2x1xf32>
    %31 = arith.addf %30, %29 : vector<2x1xf32>
    %32 = arith.divf %30, %31 : vector<2x1xf32>
    %c0_20 = arith.constant 0 : index
    %c0_21 = arith.constant 0 : index
    %33 = vector.load %arg8[%c0_20, %c0_21] : memref<4x2xf32, #tpu.memory_space<vmem>>, vector<4x2xf32>
    %34 = vector.extract_strided_slice %33 {offsets = [0, 0], sizes = [1, 2], strides = [1, 1]} : vector<4x2xf32> to vector<1x2xf32>
    %35 = vector.broadcast %10 : vector<2x1xf32> to vector<2x2xf32>
    %36 = vector.broadcast %34 : vector<1x2xf32> to vector<2x2xf32>
    %37 = arith.mulf %35, %36 : vector<2x2xf32>
    %38 = vector.extract_strided_slice %33 {offsets = [1, 0], sizes = [1, 2], strides = [1, 1]} : vector<4x2xf32> to vector<1x2xf32>
    %39 = vector.broadcast %21 : vector<2x1xf32> to vector<2x2xf32>
    %40 = vector.broadcast %38 : vector<1x2xf32> to vector<2x2xf32>
    %41 = arith.mulf %39, %40 : vector<2x2xf32>
    %42 = arith.addf %37, %41 : vector<2x2xf32>
    %43 = vector.extract_strided_slice %33 {offsets = [2, 0], sizes = [1, 2], strides = [1, 1]} : vector<4x2xf32> to vector<1x2xf32>
    %44 = vector.broadcast %32 : vector<2x1xf32> to vector<2x2xf32>
    %45 = vector.broadcast %43 : vector<1x2xf32> to vector<2x2xf32>
    %46 = arith.mulf %44, %45 : vector<2x2xf32>
    %47 = arith.addf %42, %46 : vector<2x2xf32>
    %48 = vector.extract_strided_slice %33 {offsets = [3, 0], sizes = [1, 2], strides = [1, 1]} : vector<4x2xf32> to vector<1x2xf32>
    %49 = vector.broadcast %48 : vector<1x2xf32> to vector<2x2xf32>
    %50 = arith.addf %47, %49 : vector<2x2xf32>
    %51 = vector.extract_strided_slice %50 {offsets = [0, 1], sizes = [2, 1], strides = [1, 1]} : vector<2x2xf32> to vector<2x1xf32>
    %52 = vector.extract_strided_slice %50 {offsets = [0, 0], sizes = [2, 1], strides = [1, 1]} : vector<2x2xf32> to vector<2x1xf32>
    %53 = arith.subf %51, %52 : vector<2x1xf32>
    %54 = arith.negf %53 : vector<2x1xf32>
    %55 = math.exp %54 : vector<2x1xf32>
    %cst_22 = arith.constant 1.000000e+00 : f32
    %56 = vector.broadcast %cst_22 : f32 to vector<2x1xf32>
    %57 = arith.addf %56, %55 : vector<2x1xf32>
    %58 = arith.divf %56, %57 : vector<2x1xf32>
    %cst_23 = arith.constant 1.000000e+00 : f32
    %59 = vector.broadcast %cst_23 : f32 to vector<2x1xf32>
    %60 = arith.subf %59, %58 : vector<2x1xf32>
    %61 = tpu.concatenate %60, %58 in 1 : vector<2x1xf32>, vector<2x1xf32> -> vector<2x2xf32>
    %c0_24 = arith.constant 0 : index
    %c0_25 = arith.constant 0 : index
    %62 = vector.load %arg9[%c0_24, %c0_25] : memref<2x2xf32, #tpu.memory_space<vmem>>, vector<2x2xf32>
    tpu.vector_store %arg9[%c0_24, %c0_25], %61 {strides = array<i32>} : memref<2x2xf32, #tpu.memory_space<vmem>>, vector<2x2xf32>,
    return
  }
  func.func @transform_0(%arg0: i32) -> (i32, i32) {
    %c0_i32 = arith.constant 0 : i32
    %c0_i32_0 = arith.constant 0 : i32
    return %arg0, %c0_i32 : i32, i32
  }
  func.func @transform_1(%arg0: i32) -> (i32, i32) {
    %c0_i32 = arith.constant 0 : i32
    %c0_i32_0 = arith.constant 0 : i32
    return %arg0, %c0_i32 : i32, i32
  }
  func.func @transform_2(%arg0: i32) -> (i32, i32) {
    %c0_i32 = arith.constant 0 : i32
    %c0_i32_0 = arith.constant 0 : i32
    return %arg0, %c0_i32 : i32, i32
  }
  func.func @transform_3(%arg0: i32) -> (i32, i32) {
    %c0_i32 = arith.constant 0 : i32
    %c0_i32_0 = arith.constant 0 : i32
    %c0_i32_1 = arith.constant 0 : i32
    return %c0_i32, %c0_i32_0 : i32, i32
  }
  func.func @transform_4(%arg0: i32) -> (i32, i32) {
    %c0_i32 = arith.constant 0 : i32
    %c0_i32_0 = arith.constant 0 : i32
    %c0_i32_1 = arith.constant 0 : i32
    return %c0_i32, %c0_i32_0 : i32, i32
  }
  func.func @transform_5(%arg0: i32) -> (i32, i32) {
    %c0_i32 = arith.constant 0 : i32
    %c0_i32_0 = arith.constant 0 : i32
    %c0_i32_1 = arith.constant 0 : i32
    return %c0_i32, %c0_i32_0 : i32, i32
  }
  func.func @transform_6(%arg0: i32) -> (i32, i32) {
    %c0_i32 = arith.constant 0 : i32
    %c0_i32_0 = arith.constant 0 : i32
    %c0_i32_1 = arith.constant 0 : i32
    return %c0_i32, %c0_i32_0 : i32, i32
  }
  func.func @transform_7(%arg0: i32) -> (i32, i32) {
    %c0_i32 = arith.constant 0 : i32
    %c0_i32_0 = arith.constant 0 : i32
    %c0_i32_1 = arith.constant 0 : i32
    return %c0_i32, %c0_i32_0 : i32, i32
  }
  func.func @transform_8(%arg0: i32) -> (i32, i32) {
    %c0_i32 = arith.constant 0 : i32
    %c0_i32_0 = arith.constant 0 : i32
    return %arg0, %c0_i32 : i32, i32
  }
}

</mosaic_0001>

<bundles_post_ra>
// kernel: _fd_model_forward_impl.1
= control target key start
LH: loop header
LB: loop body
LE: loop exit
PB: predicated region body
PF: predicated region fallthrough
CT: control target
= control target key end

     0   :  { %v683_v3 = vmov 0.0|0.0   ;;  %vm684_vm0 = vmmov 0   ;;  %v685_v8 = vmov 0.0   ;;  %vm46_vm1 = vcmask 523264   ;;  %s981_s0 = inlined_call_operand.vmem [shape: f32[2,64], index: 0, kind: input, shape index: {}]   ;;  %s982_s1 = inlined_call_operand.vmem [shape: f32[2,256], index: 1, kind: input, shape index: {}]   ;;  %s983_s2 = inlined_call_operand.vmem [shape: f32[2,256], index: 2, kind: input, shape index: {}]   ;;  %s984_s3 = inlined_call_operand.vmem [shape: f32[64,1], index: 3, kind: input, shape index: {}]   ;;  %s985_s4 = inlined_call_operand.vmem [shape: f32[256,1], index: 4, kind: input, shape index: {}]   ;;  %s986_s5 = inlined_call_operand.vmem [shape: f32[256,1], index: 5, kind: input, shape index: {}]   ;;  %s987_s6 = inlined_call_operand.vmem [shape: f32[1,3], index: 6, kind: input, shape index: {}]   ;;  %s988_s7 = inlined_call_operand.vmem [shape: f32[4,2], index: 7, kind: input, shape index: {}]   ;;  %s989_s8 = inlined_call_operand.hbm [shape: f32[2,2], index: 8, kind: output, shape index: {}]  }
   0x1   :  { %v31_v0 = vld [vmem:[%s984_s3] sm:$0xff]  ;;  %v32_v1 = vld [vmem:[%s984_s3 + $0x8] sm:$0xff]  ;;  %557 = vmatprep.subr.bf16.mxu0 %v683_v3  ;;  %554 = vmatprep.mubr.msk.f32.mxu0 %vm684_vm0, %v685_v8  ;;  %v33_v11 = vld [vmem:[%s984_s3 + $0x10] sm:$0xff] }
   0x2   :  { %v143_v2 = vld [vmem:[%s985_s4 + $0x80] sm:$0xff]  ;;  %v558_v4 = vpack.c.bf16 %v32_v1, %v31_v0  ;;  %v144_v5 = vld [vmem:[%s985_s4 + $0x88] sm:$0xff]  ;;  %v34_v12 = vld [vmem:[%s984_s3 + $0x18] sm:$0xff] }
   0x3   :  { %v127_v6 = vld [vmem:[%s985_s4] sm:$0xff]  ;;  %v128_v7 = vld [vmem:[%s985_s4 + $0x8] sm:$0xff]  ;;  %v569_v9 = vpack.c.bf16 %v144_v5, %v143_v2  ;;  %v145_v13 = vld [vmem:[%s985_s4 + $0x90] sm:$0xff]  ;;  %v561_v14 = vpack.c.bf16 %v34_v12, %v33_v11 }
   0x4   :  { %v571_v10 = vpack.c.bf16 %v128_v7, %v127_v6  ;;  %559 = vmatpush3.bf16.msra.mxu0 %v558_v4  ;;  %v146_v15 = vld [vmem:[%s985_s4 + $0x98] sm:$0xff]  ;;  %v129_v16 = vld [vmem:[%s985_s4 + $0x10] sm:$0xff]  ;;  %v35_v19 = vld [vmem:[%s984_s3 + $0x20] sm:$0xff] }
   0x5   :  { %v130_v17 = vld [vmem:[%s985_s4 + $0x18] sm:$0xff]  ;;  %570 = vmatprep.subr.bf16.mxu1 %v569_v9  ;;  %560 = vmatprep.subr.bf16.mxu0 %v683_v3  ;;  %v573_v18 = vpack.c.bf16 %v146_v15, %v145_v13  ;;  %v36_v20 = vld [vmem:[%s984_s3 + $0x28] sm:$0xff]  ;;  %v147_v21 = vld [vmem:[%s985_s4 + $0xa0] sm:$0xff] }
   0x6   :  { %572 = vmatpush3.bf16.msra.mxu1 %v571_v10  ;;  %v575_v22 = vpack.c.bf16 %v130_v17, %v129_v16  ;;  %v148_v23 = vld [vmem:[%s985_s4 + $0xa8] sm:$0xff]  ;;  %v131_v25 = vld [vmem:[%s985_s4 + $0x20] sm:$0xff]  ;;  %v564_v27 = vpack.c.bf16 %v36_v20, %v35_v19  ;;  %v149_v28 = vld [vmem:[%s985_s4 + $0xb0] sm:$0xff] }
   0x7   :  { %574 = vmatprep.subr.bf16.mxu1 %v573_v18  ;;  %v577_v24 = vpack.c.bf16 %v148_v23, %v147_v21  ;;  %v132_v26 = vld [vmem:[%s985_s4 + $0x28] sm:$0xff]  ;;  %v150_v29 = vld [vmem:[%s985_s4 + $0xb8] sm:$0xff]  ;;  %v37_v30 = vld [vmem:[%s984_s3 + $0x30] sm:$0xff] }
   0x8   :  { %562 = vmatpush3.bf16.msra.mxu0 %v561_v14  ;;  %v38_v31 = vld [vmem:[%s984_s3 + $0x38] sm:$0xff]  ;;  %v579_v32 = vpack.c.bf16 %v132_v26, %v131_v25  ;;  %v266_v33 = vld [vmem:[%s986_s5 + $0x80] sm:$0xff]  ;;  %v267_v34 = vld [vmem:[%s986_s5 + $0x88] sm:$0xff]  ;;  %v581_v35 = vpack.c.bf16 %v150_v29, %v149_v28 }
   0x9   :  { %563 = vmatprep.subr.bf16.mxu0 %v683_v3  ;;  %v133_v36 = vld [vmem:[%s985_s4 + $0x30] sm:$0xff]  ;;  %v134_v37 = vld [vmem:[%s985_s4 + $0x38] sm:$0xff]  ;;  %v567_v38 = vpack.c.bf16 %v38_v31, %v37_v30  ;;  %v151_v39 = vld [vmem:[%s985_s4 + $0xc0] sm:$0xff]  ;;  %v601_v41 = vpack.c.bf16 %v267_v34, %v266_v33 }
   0xa   :  { %576 = vmatpush3.bf16.msra.mxu1 %v575_v22  ;;  %v152_v40 = vld [vmem:[%s985_s4 + $0xc8] sm:$0xff]  ;;  %v250_v42 = vld [vmem:[%s986_s5] sm:$0xff]  ;;  %v583_v44 = vpack.c.bf16 %v134_v37, %v133_v36  ;;  %v268_v45 = vld [vmem:[%s986_s5 + $0x90] sm:$0xff] }
   0xb   :  { %578 = vmatprep.subr.bf16.mxu1 %v577_v24  ;;  %v251_v43 = vld [vmem:[%s986_s5 + $0x8] sm:$0xff]  ;;  %v269_v46 = vld [vmem:[%s986_s5 + $0x98] sm:$0xff]  ;;  %v585_v47 = vpack.c.bf16 %v152_v40, %v151_v39  ;;  %v135_v48 = vld [vmem:[%s985_s4 + $0x40] sm:$0xff] }
   0xc   :  { %565 = vmatpush3.bf16.msra.mxu0 %v564_v27  ;;  %v136_v49 = vld [vmem:[%s985_s4 + $0x48] sm:$0xff]  ;;  %v30_v50 = vld [vmem:[%s981_s0] sm:$0x3]  ;;  %v603_v51 = vpack.c.bf16 %v251_v43, %v250_v42  ;;  %v153_v52 = vld [vmem:[%s985_s4 + $0xd0] sm:$0xff]  ;;  %v605_v54 = vpack.c.bf16 %v269_v46, %v268_v45 }
   0xd   :  { %566 = vmatprep.subr.bf16.mxu0 %v683_v3  ;;  %v154_v53 = vld [vmem:[%s985_s4 + $0xd8] sm:$0xff]  ;;  %v252_v55 = vld [vmem:[%s986_s5 + $0x10] sm:$0xff]  ;;  %v587_v57 = vpack.c.bf16 %v136_v49, %v135_v48  ;;  %v270_v58 = vld [vmem:[%s986_s5 + $0xa0] sm:$0xff] }
   0xe   :  { %580 = vmatpush3.bf16.msra.mxu1 %v579_v32  ;;  %v253_v56 = vld [vmem:[%s986_s5 + $0x18] sm:$0xff]  ;;  %v271_v59 = vld [vmem:[%s986_s5 + $0xa8] sm:$0xff]  ;;  %v589_v60 = vpack.c.bf16 %v154_v53, %v153_v52  ;;  %v137_v61 = vld [vmem:[%s985_s4 + $0x50] sm:$0xff] }
   0xf   :  { %582 = vmatprep.subr.bf16.mxu1 %v581_v35  ;;  %v138_v62 = vld [vmem:[%s985_s4 + $0x58] sm:$0xff]  ;;  %v607_v63 = vpack.c.bf16 %v253_v56, %v252_v55  ;;  %v155_v0 = vld [vmem:[%s985_s4 + $0xe0] sm:$0xff]  ;;  %v156_v1 = vld [vmem:[%s985_s4 + $0xe8] sm:$0xff]  ;;  %v609_v3 = vpack.c.bf16 %v271_v59, %v270_v58 }
  0x10   :  { %568 = vmatpush3.bf16.msra.mxu0 %v567_v38  ;;  %v453_v2 = vld.sshfl [vmem:[%s982_s1] sm:$0x33 pattern:$0x76325410]  ;;  %v255_v5 = vld [vmem:[%s986_s5 + $0x28] sm:$0xff]  ;;  %v591_v7 = vpack.c.bf16 %v138_v62, %v137_v61  ;;  %v272_v8 = vld [vmem:[%s986_s5 + $0xb0] sm:$0xff]  ;;  %v593_v10 = vpack.c.bf16 %v156_v1, %v155_v0 }
  0x11   :  { %602 = vmatprep.subr.bf16.mxu0 %v601_v41  ;;  %v254_v4 = vld [vmem:[%s986_s5 + $0x20] sm:$0xff]  ;;  %v167_v6 = vcombine.high %v453_v2, %v453_v2  ;;  %v273_v9 = vld [vmem:[%s986_s5 + $0xb8] sm:$0xff]  ;;  %v140_v12 = vld [vmem:[%s985_s4 + $0x68] sm:$0xff] }
  0x12   :  { %584 = vmatpush3.bf16.msra.mxu1 %v583_v44  ;;  %v139_v11 = vld [vmem:[%s985_s4 + $0x60] sm:$0xff]  ;;  %v611_v13 = vpack.c.bf16 %v255_v5, %v254_v4  ;;  %v157_v14 = vld [vmem:[%s985_s4 + $0xf0] sm:$0xff]  ;;  %v158_v15 = vld [vmem:[%s985_s4 + $0xf8] sm:$0xff]  ;;  %v613_v17 = vpack.c.bf16 %v273_v9, %v272_v8 }
  0x13   :  { %555 = vmatmul.mubr.msk.f32.vlgmr.msra.gmra.mrb[0].mxu0 %vm46_vm1, %v30_v50  ;;  %586 = vmatprep.subr.bf16.mxu1 %v585_v47  ;;  %v256_v16 = vld [vmem:[%s986_s5 + $0x30] sm:$0xff]  ;;  %v257_v18 = vld [vmem:[%s986_s5 + $0x38] sm:$0xff]  ;;  %v274_v19 = vld [vmem:[%s986_s5 + $0xc0] sm:$0xff]  ;;  %v595_v21 = vpack.c.bf16 %v140_v12, %v139_v11 }
  0x14   :  { %604 = vmatpush3.bf16.msra.mxu0 %v603_v51  ;;  %237 = vmatprep.mubr.f32.mxu1 %v167_v6  ;;  %v456_v20 = vld.sshfl [vmem:[%s983_s2] sm:$0x33 pattern:$0x76325410]  ;;  %v275_v22 = vld [vmem:[%s986_s5 + $0xc8] sm:$0xff] }
  0x15   :  { %606 = vmatprep.subr.bf16.mxu0 %v605_v54  ;;  %v296_v23 = vcombine.high %v456_v20, %v456_v20  ;;  %v450_v24 = vld [vmem:[%s987_s6] ss:$0 sm:$0xff] }
  0x16   :  { %588 = vmatpush3.bf16.msra.mxu1 %v587_v57 }
  0x17   :  { %590 = vmatprep.subr.bf16.mxu1 %v589_v60 }
  0x18   :  { %608 = vmatpush3.bf16.msra.mxu0 %v607_v63 }
  0x19   :  { %610 = vmatprep.subr.bf16.mxu0 %v609_v3 }
  0x1a   :  { %592 = vmatpush3.bf16.msra.mxu1 %v591_v7 }
  0x1b   :  { %13 = vsyncpa [#allocation3], 0  ;;  %594 = vmatprep.subr.bf16.mxu1 %v593_v10  ;;  %v597_v25 = vpack.c.bf16 %v158_v15, %v157_v14  ;;  %v141_v26 = vld [vmem:[%s985_s4 + $0x70] sm:$0xff]  ;;  %v142_v27 = vld [vmem:[%s985_s4 + $0x78] sm:$0xff]  ;;  %s686_s12 = smov 127   ;;  %v615_v28 = vpack.c.bf16 %v257_v18, %v256_v16  ;;  %366 = vmatprep.mubr.f32.mxu0 %v296_v23  ;;  %v617_v29 = vpack.c.bf16 %v275_v22, %v274_v19  ;;  %s687_s16 = smov 126   ;;  %v384_v14 = vlaneseq }
  0x1c   :  { %170 = vrot.lane.b32.xlu0 %v450_v24, %s686_s12  ;;  %612 = vmatpush3.bf16.msra.mxu0 %v611_v13  ;;  %v258_v30 = vld [vmem:[%s986_s5 + $0x40] sm:$0xff]  ;;  %v259_v31 = vld [vmem:[%s986_s5 + $0x48] sm:$0xff]  ;;  %v599_v32 = vpack.c.bf16 %v142_v27, %v141_v26  ;;  %v276_v33 = vld [vmem:[%s986_s5 + $0xd0] sm:$0xff]  ;;  %v688_v52 = vmov 0   ;;  %s689_s13 = smov 1   ;;  %vm432_vm2 = vcmask 7168  }
  0x1d   :  { %614 = vmatprep.subr.bf16.mxu0 %v613_v17  ;;  %v277_v34 = vld [vmem:[%s986_s5 + $0xd8] sm:$0xff]  ;;  %v619_v35 = vpack.c.bf16 %v259_v31, %v258_v30  ;;  %v260_v37 = vld [vmem:[%s986_s5 + $0x50] sm:$0xff]  ;;  %v278_v39 = vld [vmem:[%s986_s5 + $0xe0] sm:$0xff]  ;;  %641 = vset.pattern.permute.xlu1 %v688_v52  ;;  %v385_v15 = vshrl.u32 %v384_v14, 7  ;;  %vm434_vm3 = vcmask 9216  }
  0x1e   :  { %596 = vmatpush3.bf16.msra.mxu1 %v595_v21  ;;  %v621_v36 = vpack.c.bf16 %v277_v34, %v276_v33  ;;  %v261_v38 = vld [vmem:[%s986_s5 + $0x58] sm:$0xff]  ;;  %v279_v40 = vld [vmem:[%s986_s5 + $0xe8] sm:$0xff]  ;;  %v262_v43 = vld [vmem:[%s986_s5 + $0x60] sm:$0xff]  ;;  %642 = vset.pattern.permute.xlu0 %v688_v52 }
  0x1f   :  { %598 = vmatprep.subr.bf16.mxu1 %v597_v25  ;;  %v623_v41 = vpack.c.bf16 %v261_v38, %v260_v37  ;;  %v625_v42 = vpack.c.bf16 %v279_v40, %v278_v39  ;;  %v263_v44 = vld [vmem:[%s986_s5 + $0x68] sm:$0xff]  ;;  %v280_v45 = vld [vmem:[%s986_s5 + $0xf0] sm:$0xff]  ;;  %v281_v46 = vld [vmem:[%s986_s5 + $0xf8] sm:$0xff]  ;;  %v396_v16 = vsub.s32 1, %v385_v15  ;;  %v386_v18 = vsub.s32 0, %v385_v15 }
  0x20   :  { %299 = vrot.lane.b32.xlu0 %v450_v24, %s687_s16  ;;  %616 = vmatpush3.bf16.msra.mxu0 %v615_v28  ;;  %v627_v47 = vpack.c.bf16 %v263_v44, %v262_v43  ;;  %v629_v48 = vpack.c.bf16 %v281_v46, %v280_v45  ;;  %v264_v49 = vld [vmem:[%s986_s5 + $0x70] sm:$0xff]  ;;  %v265_v50 = vld [vmem:[%s986_s5 + $0x78] sm:$0xff]  ;;  %v378_v19 = vld [vmem:[%s988_s7] sm:$0xf]  ;;  %v407_v21 = vsub.s32 2, %v385_v15  ;;  %v413_v26 = vsub.s32 3, %v385_v15 }
  0x21   :  { %618 = vmatprep.subr.bf16.mxu0 %v617_v29  ;;  %v631_v51 = vpack.c.bf16 %v265_v50, %v264_v49  ;;  %v387_v23 = vrot.slane %v378_v19, %v386_v18  ;;  %s690_s7 = smov [#allocation2]  }
  0x22   :  { %600 = vmatpush3.bf16.msra.mxu1 %v599_v32  ;;  %v408_v25 = vrot.slane %v378_v19, %v407_v21  ;;  %v414_v31 = vrot.slane %v378_v19, %v413_v26  ;;  %s442_s14 = sshll.u32 %s690_s7, 4  ;;  %s443_s14 = int_to_ptr.vmem [resolvable:$true] %s442_s14 }
  0x23   :  { %s659_s4 = scalar_lea.vmem %s443_s14, 32  ;;  %p664_p1 = scmp.lt.s32.totalorder %s443_s14, %s443_s14 }
  0x24   :  { %620 = vmatpush3.bf16.msra.mxu0 %v619_v35  ;;  %p660_p0 = scmp.ne.s32.totalorder %s443_s14, %s659_s4  ;;  %p665_p2 = scmp.lt.s32.totalorder %s659_s4, %s659_s4 }
  0x25   :  { %238 = vmatmul.mubr.f32.vlgmr.msra.gmra.mrb[0].mxu1 %v453_v2  ;;  %622 = vmatprep.subr.bf16.mxu0 %v621_v36 }
  0x26   :  { %p666_p3 = por %p665_p2, %p664_p1 }
  0x28   :  { %624 = vmatpush3.bf16.msra.mxu0 %v623_v41  ;;  %p667_p4 = pnand %p666_p3, %p660_p0 }
  0x29   :  { %626 = vmatprep.subr.bf16.mxu0 %v625_v42 }
  0x2c   :  { %628 = vmatpush3.bf16.msra.mxu0 %v627_v47 }
  0x2d   :  { %630 = vmatprep.subr.bf16.mxu0 %v629_v48 }
  0x30   :  { %632 = vmatpush3.bf16.msra.mxu0 %v631_v51 }
  0x33   :  { %367 = vmatmul.mubr.f32.vlgmr.msra.gmra.mrb[2].mxu0 %v456_v20  ;;  %v397_v20 = vrot.slane %v378_v19, %v396_v16 }
  0x8e   :  { %v171_v61 = vpop.permute.xlu0 %170 }
  0x92   :  { %v300_v4 = vpop.permute.xlu0 %299 }
  0xe6   :  { %v116_v53 = vpop.f32.mrb[0].mxu0 }
  0xe7   :  { %v117_v54 = vadd.f32 %v450_v24, %v116_v53  ;;  %v556_v55 = vpop.f32.mrb[1].mxu0 }
  0xe9   :  { %v452_v56 = vmul.f32 -1.442695, %v117_v54 }
  0xeb   :  { %643 = vpow2.f32 %v452_v56 }
  0xf5   :  { %v644_v57 = vpop.eup %643 }
  0xf6   :  { %v123_v58 = vadd.f32 1.0, %v644_v57 }
  0xf8   :  { %645 = vrcp.f32 %v123_v58  ;;  %v500_v59 = vpop.f32.mrb[0].mxu1 }
  0xf9   :  { %v501_v60 = vpop.f32.mrb[1].mxu1 }
  0xfa   :  { %v502_v62 = vadd.f32 %v501_v60, %v500_v59 }
  0xfc   :  { %v240_v63 = vadd.f32 %v502_v62, %v171_v61 }
  0xfe   :  { %v454_v0 = vmul.f32 -1.442695, %v240_v63 }
 0x100   :  { %647 = vpow2.f32 %v454_v0 }
 0x102   :  { %v646_v1 = vpop.eup %645 }
 0x103   :  { %381 = vperm.xlu1 %641, %v646_v1  }
 0x106   :  { %v535_v2 = vpop.f32.mrb[2].mxu0 }
 0x107   :  { %v536_v3 = vpop.f32.mrb[3].mxu0 }
 0x108   :  { %v537_v5 = vadd.f32 %v536_v3, %v535_v2 }
 0x10a   :  { %v648_v6 = vpop.eup %647  ;;  %v369_v7 = vadd.f32 %v537_v5, %v300_v4 }
 0x10b   :  { %v246_v8 = vadd.f32 1.0, %v648_v6 }
 0x10c   :  { %v457_v9 = vmul.f32 -1.442695, %v369_v7 }
 0x10d   :  { %649 = vrcp.f32 %v246_v8 }
 0x10e   :  { %651 = vpow2.f32 %v457_v9 }
 0x117   :  { %v650_v10 = vpop.eup %649 }
 0x118   :  { %v652_v11 = vpop.eup %651  ;;  %391 = vperm.xlu1 %641, %v650_v10  }
 0x119   :  { %v375_v12 = vadd.f32 1.0, %v652_v11 }
 0x11b   :  { %653 = vrcp.f32 %v375_v12 }
 0x125   :  { %v654_v13 = vpop.eup %653 }
 0x126   :  { %402 = vperm.xlu0 %642, %v654_v13  }
 0x182   :  { %v382_v17 = vpop.permute.xlu1 %381 }
 0x183   :  { %v388_v27 = vmul.f32 %v387_v23, %v382_v17 }
 0x197   :  { %v392_v22 = vpop.permute.xlu1 %391 }
 0x198   :  { %v398_v24 = vmul.f32 %v397_v20, %v392_v22 }
 0x19a   :  { %v399_v29 = vadd.f32 %v398_v24, %v388_v27 }
 0x1a5   :  { %v403_v28 = vpop.permute.xlu0 %402 }
 0x1a6   :  { %v409_v30 = vmul.f32 %v408_v25, %v403_v28 }
 0x1a8   :  { %v410_v32 = vadd.f32 %v409_v30, %v399_v29 }
 0x1aa   :  { %v415_v33 = vadd.f32 %v414_v31, %v410_v32 }
 0x1ac   :  { %417 = vrot.lane.b32.xlu1 %v415_v33, %s689_s13 }
 0x21e   :  { %v418_v34 = vpop.permute.xlu1 %417 }
 0x21f   :  { %v420_v35 = vsub.f32 %v415_v33, %v418_v34 }
 0x221   :  { %v458_v36 = vmul.f32 -1.442695, %v420_v35 }
 0x223   :  { %655 = vpow2.f32 %v458_v36 }
 0x22d   :  { %v656_v37 = vpop.eup %655 }
 0x22e   :  { %v424_v38 = vadd.f32 1.0, %v656_v37 }
 0x230   :  { %657 = vrcp.f32 %v424_v38 }
 0x23a   :  { %v658_v39 = vpop.eup %657 }
 0x23b   :  { %v427_v40 = vsub.f32 1.0, %v658_v39 }
 0x23d   :  { %429 = vrot.lane.b32.xlu1 %v427_v40, %s686_s12 }
 0x2af   :  { %v430_v41 = vpop.permute.xlu1 %429 }
 0x2b0   :  { %v433_v42 = vsel %vm432_vm2, %v430_v41, %v658_v39 }
 0x2b1   :  { %435 = vst.msk [vmem:[#allocation2] sm:$0x3] %vm434_vm3, %v433_v42 }
 0x2b2   :  { %670 = shalt.err (!%p667_p4)
}
 0x2b3   :  { %s671_s16 = scalar_lea.hbm %s989_s8, 32 }
 0x2b4   :  { %p672_p5 = scmp.ne.s32.totalorder %s989_s8, %s671_s16  ;;  %p675_p6 = scmp.lt.u32.totalorder %s671_s16, %s989_s8 }
 0x2b6   :  { %p677_p7 = pnand %p675_p6, %p672_p5 }
 0x2b8   :  { %680 = shalt.err (!%p677_p7)
}
 0x2b9   :  { %445 = dma.vmem_to_hbm [thread:$0]  %s443_s14, 32, %s989_s8, [#allocation3]  }
 0x2ba   :  { %681 = dma.done.wait [#allocation3], 32  }
 0x2bb   :  { %682 = vsyncadd [#allocation3], 4294967264 }
 0x2bc   :  { %449 = vsyncpa [#allocation3], 1 }

</bundles_post_ra>
